<compile_context>
chip_gen: v6e
topology: v6e:2x2x1
jax: 0.10.0
libtpu: 0.0.40
codegen_flags: <defaults>
</compile_context>

<pallas_src>
import jax
import jax.numpy as jnp
from jax import lax
from jax.experimental import pallas as pl
from jax.experimental.pallas import tpu as pltpu

LAMBDA_NOOBJ = 0.5
LAMBDA_COORD = 5.0
GRID_H = 10            # hardcoded 10x10 loop window in the reference forward()
GRID_W = 10
N_CHAN = 5
N_CELLS = GRID_H * GRID_W
N_REAL_LANES = N_CELLS * N_CHAN              # 500 values per batch element
LANE_WIDTH = 512                             # padded to a multiple of 128 lanes
MAX_BLOCK_ROWS = 256                         # batch rows per grid step


def yolo_loss_kernel(pred_ref, tgt_ref, confb_ref, out_ref):
    """pred/tgt/confb: (TB, 512) VMEM; out_ref: (4,) SMEM [box, obj, noobj, total]."""
    p = pred_ref[...].astype(jnp.float32)
    t = tgt_ref[...].astype(jnp.float32)
    conf_t = confb_ref[...].astype(jnp.float32)   # cell's target conf on all 5 lanes
    d2 = (t - p) ** 2

    # Within each 5-lane cell group: lane%5 == 0 -> confidence, 1..4 -> x,y,h,w.
    lane_mod = lax.broadcasted_iota(jnp.int32, p.shape, 1) % N_CHAN
    is_conf = lane_mod == 0
    is_obj = conf_t == 1.0   # exact compare, matching the PyTorch reference

    # Zero-padded lanes / rows have p == t == 0 => d2 == 0 => contribute nothing.
    box = LAMBDA_COORD * jnp.sum(jnp.where(is_obj & jnp.logical_not(is_conf), d2, 0.0))
    obj = jnp.sum(jnp.where(is_obj & is_conf, d2, 0.0))
    noobj = LAMBDA_NOOBJ * jnp.sum(
        jnp.where(jnp.logical_not(is_obj) & is_conf, d2, 0.0))

    step = pl.program_id(0)

    @pl.when(step == 0)
    def _init():
        out_ref[0] = jnp.float32(0.0)
        out_ref[1] = jnp.float32(0.0)
        out_ref[2] = jnp.float32(0.0)
        out_ref[3] = jnp.float32(0.0)

    out_ref[0] = out_ref[0] + box
    out_ref[1] = out_ref[1] + obj
    out_ref[2] = out_ref[2] + noobj

    @pl.when(step == pl.num_programs(0) - 1)
    def _finalize():
        out_ref[3] = out_ref[0] + out_ref[1] + out_ref[2]


def _round_up(x, m):
    return (x + m - 1) // m * m


@jax.jit
def yolo_loss(predictions, target):
    """predictions, target: (B, H, W, 5) — same layout as the PyTorch module."""
    B, H, W, C = predictions.shape
    assert C == N_CHAN and H >= GRID_H and W >= GRID_W

    # Keep bf16 storage (halves DMA); anything exotic is promoted to f32 here.
    in_dtype = predictions.dtype if predictions.dtype in (jnp.float32, jnp.bfloat16) \
        else jnp.float32

    tb = B if B <= MAX_BLOCK_ROWS else MAX_BLOCK_ROWS
    b_pad = B if B <= MAX_BLOCK_ROWS else _round_up(B, MAX_BLOCK_ROWS)
    num_blocks = b_pad // tb

    def pad_rows_lanes(x2d):
        return jnp.pad(x2d, ((0, b_pad - B), (0, LANE_WIDTH - N_REAL_LANES)))

    def prep(x):
        # One fused copy: 10x10 window slice + flatten + zero-pad (lane-dense).
        x = x[:, :GRID_H, :GRID_W, :].astype(in_dtype).reshape(B, N_REAL_LANES)
        return pad_rows_lanes(x)

    p = prep(predictions)
    t = prep(target)

    # Per-cell target confidence replicated onto all 5 lanes of that cell, so the
    # kernel needs no cross-lane data movement (no roll/gather), only elementwise.
    conf = target[:, :GRID_H, :GRID_W, 0].astype(in_dtype).reshape(B, N_CELLS)
    conf_b = pad_rows_lanes(jnp.repeat(conf, N_CHAN, axis=1))

    elems = b_pad * LANE_WIDTH
    cost = pl.CostEstimate(
        flops=16 * elems,
        transcendentals=0,
        bytes_accessed=3 * elems * jnp.dtype(in_dtype).itemsize + 16,
    )

    out = pl.pallas_call(
        yolo_loss_kernel,
        out_shape=jax.ShapeDtypeStruct((4,), jnp.float32),
        grid=(num_blocks,),
        in_specs=[
            pl.BlockSpec((tb, LANE_WIDTH), lambda i: (i, 0)),
            pl.BlockSpec((tb, LANE_WIDTH), lambda i: (i, 0)),
            pl.BlockSpec((tb, LANE_WIDTH), lambda i: (i, 0)),
        ],
        out_specs=pl.BlockSpec(memory_space=pltpu.MemorySpace.SMEM),
        compiler_params=pltpu.CompilerParams(dimension_semantics=("arbitrary",)),
        cost_estimate=cost,
    )(p, t, conf_b)

    box_loss = out[0]
    object_loss = out[1]
    no_object_loss = out[2]
    loss = out[3]
    return loss, box_loss, object_loss, no_object_loss


def yolo_loss_ref(predictions, target):
    """Pure-JAX reference reproducing the PyTorch loops exactly (vectorized)."""
    p = predictions.astype(jnp.float32)[:, :GRID_H, :GRID_W, :]
    t = target.astype(jnp.float32)[:, :GRID_H, :GRID_W, :]
    d2 = (t - p) ** 2
    c_d = d2[..., 0]
    coord_d = jnp.sum(d2[..., 1:], axis=-1)
    obj = t[..., 0] == 1.0
    box = LAMBDA_COORD * jnp.sum(jnp.where(obj, coord_d, 0.0))
    objl = jnp.sum(jnp.where(obj, c_d, 0.0))
    noobjl = LAMBDA_NOOBJ * jnp.sum(jnp.where(~obj, c_d, 0.0))
    return box + objl + noobjl, box, objl, noobjl


if __name__ == "__main__":
    # Small shapes consistent with the module: [BATCH, HEIGHT, WIDTH, 5].
    # H = W = 12 (>= the hardcoded 10x10 window) to exercise the window slicing.
    B, H, W, C = 2, 12, 12, 5
    key = jax.random.PRNGKey(0)
    kp, kc, kb = jax.random.split(key, 3)

    predictions = jax.random.uniform(kp, (B, H, W, C), dtype=jnp.float32)
    # Target: confidence channel is exact 0/1 (as the loss expects), coords uniform.
    conf = jax.random.bernoulli(kb, p=0.3, shape=(B, H, W, 1)).astype(jnp.float32)
    coords = jax.random.uniform(kc, (B, H, W, C - 1), dtype=jnp.float32)
    target = jnp.concatenate([conf, coords], axis=-1)

    loss, box_loss, object_loss, no_object_loss = jax.block_until_ready(
        yolo_loss(predictions, target)
    )

    ref = yolo_loss_ref(predictions, target)
    for got, want in zip((loss, box_loss, object_loss, no_object_loss), ref):
        assert jnp.allclose(got, want, rtol=1e-4, atol=1e-4), (got, want)

    print("KERNEL_OK")
</pallas_src>

<mosaic_0001>
module attributes {stable_mosaic.version = 11 : i64} {
  func.func @yolo_loss_kernel(%arg0: i32, %arg1: memref<2x512xf32, #tpu.memory_space<vmem>>, %arg2: memref<2x512xf32, #tpu.memory_space<vmem>>, %arg3: memref<2x512xf32, #tpu.memory_space<vmem>>, %arg4: memref<4xf32, #tpu.memory_space<smem>>) attributes {dimension_semantics = [#tpu.dimension_semantics<arbitrary>], iteration_bounds = array<i64: 1>, scalar_prefetch = 0 : i64, scratch_operands = 0 : i64, tpu.core_type = #tpu.core_type<tc>, window_params = [{transform_indices = @transform_0, window_bounds = array<i64: 2, 512>}, {transform_indices = @transform_1, window_bounds = array<i64: 2, 512>}, {transform_indices = @transform_2, window_bounds = array<i64: 2, 512>}, {transform_indices = @transform_3, window_bounds = array<i64: 4>}]} {
    %c0 = arith.constant 0 : index
    %c0_0 = arith.constant 0 : index
    %0 = vector.load %arg1[%c0, %c0_0] : memref<2x512xf32, #tpu.memory_space<vmem>>, vector<2x512xf32>
    %c0_1 = arith.constant 0 : index
    %c0_2 = arith.constant 0 : index
    %1 = vector.load %arg2[%c0_1, %c0_2] : memref<2x512xf32, #tpu.memory_space<vmem>>, vector<2x512xf32>
    %c0_3 = arith.constant 0 : index
    %c0_4 = arith.constant 0 : index
    %2 = vector.load %arg3[%c0_3, %c0_4] : memref<2x512xf32, #tpu.memory_space<vmem>>, vector<2x512xf32>
    %3 = arith.subf %1, %0 : vector<2x512xf32>
    %4 = arith.mulf %3, %3 : vector<2x512xf32>
    %5 = tpu.iota {dimensions = array<i32: 1>} : vector<2x512xi32>
    %c5_i32 = arith.constant 5 : i32
    %c0_i32 = arith.constant 0 : i32
    %6 = arith.cmpi eq, %c5_i32, %c0_i32 : i32
    %c1_i32 = arith.constant 1 : i32
    %7 = arith.select %6, %c1_i32, %c5_i32 : i32
    %8 = vector.broadcast %7 : i32 to vector<2x512xi32>
    %9 = arith.remsi %5, %8 : vector<2x512xi32>
    %c0_i32_5 = arith.constant 0 : i32
    %10 = vector.broadcast %c0_i32_5 : i32 to vector<2x512xi32>
    %11 = arith.cmpi ne, %9, %10 : vector<2x512xi32>
    %c0_i32_6 = arith.constant 0 : i32
    %12 = vector.broadcast %c0_i32_6 : i32 to vector<2x512xi32>
    %13 = arith.cmpi slt, %9, %12 : vector<2x512xi32>
    %c0_i32_7 = arith.constant 0 : i32
    %14 = arith.cmpi slt, %7, %c0_i32_7 : i32
    %15 = vector.broadcast %14 : i1 to vector<2x512xi1>
    %16 = vector.broadcast %15 : vector<2x512xi1> to vector<2x512xi1>
    %17 = arith.xori %13, %16 : vector<2x512xi1>
    %18 = arith.andi %17, %11 : vector<2x512xi1>
    %19 = vector.broadcast %7 : i32 to vector<2x512xi32>
    %20 = arith.addi %9, %19 : vector<2x512xi32>
    %21 = arith.select %18, %20, %9 : vector<2x512xi1>, vector<2x512xi32>
    %c0_i32_8 = arith.constant 0 : i32
    %22 = vector.broadcast %c0_i32_8 : i32 to vector<2x512xi32>
    %23 = arith.cmpi eq, %21, %22 : vector<2x512xi32>
    %cst = arith.constant 1.000000e+00 : f32
    %24 = vector.broadcast %cst : f32 to vector<2x512xf32>
    %25 = arith.cmpf oeq, %2, %24 : vector<2x512xf32>
    %cst_9 = arith.constant dense<true> : vector<2x512xi1>
    %26 = arith.xori %23, %cst_9 : vector<2x512xi1>
    %27 = arith.andi %25, %26 : vector<2x512xi1>
    %cst_10 = arith.constant 0.000000e+00 : f32
    %28 = vector.broadcast %cst_10 : f32 to vector<2x512xf32>
    %29 = arith.select %27, %4, %28 : vector<2x512xi1>, vector<2x512xf32>
    %30 = vector.shape_cast %29 : vector<2x512xf32> to vector<1x2x512xf32>
    %cst_11 = arith.constant dense<0.000000e+00> : vector<1xf32>
    %31 = vector.multi_reduction <add>, %30, %cst_11 [1, 2] : vector<1x2x512xf32> to vector<1xf32>
    %32 = vector.shape_cast %31 : vector<1xf32> to vector<1x1x1xf32>
    %33 = vector.extract %32[0, 0, 0] : f32 from vector<1x1x1xf32>
    %cst_12 = arith.constant 5.000000e+00 : f32
    %34 = arith.mulf %cst_12, %33 : f32
    %35 = arith.andi %25, %23 : vector<2x512xi1>
    %cst_13 = arith.constant 0.000000e+00 : f32
    %36 = vector.broadcast %cst_13 : f32 to vector<2x512xf32>
    %37 = arith.select %35, %4, %36 : vector<2x512xi1>, vector<2x512xf32>
    %38 = vector.shape_cast %37 : vector<2x512xf32> to vector<1x2x512xf32>
    %cst_14 = arith.constant dense<0.000000e+00> : vector<1xf32>
    %39 = vector.multi_reduction <add>, %38, %cst_14 [1, 2] : vector<1x2x512xf32> to vector<1xf32>
    %40 = vector.shape_cast %39 : vector<1xf32> to vector<1x1x1xf32>
    %41 = vector.extract %40[0, 0, 0] : f32 from vector<1x1x1xf32>
    %cst_15 = arith.constant dense<true> : vector<2x512xi1>
    %42 = arith.xori %25, %cst_15 : vector<2x512xi1>
    %43 = arith.andi %42, %23 : vector<2x512xi1>
    %cst_16 = arith.constant 0.000000e+00 : f32
    %44 = vector.broadcast %cst_16 : f32 to vector<2x512xf32>
    %45 = arith.select %43, %4, %44 : vector<2x512xi1>, vector<2x512xf32>
    %46 = vector.shape_cast %45 : vector<2x512xf32> to vector<1x2x512xf32>
    %cst_17 = arith.constant dense<0.000000e+00> : vector<1xf32>
    %47 = vector.multi_reduction <add>, %46, %cst_17 [1, 2] : vector<1x2x512xf32> to vector<1xf32>
    %48 = vector.shape_cast %47 : vector<1xf32> to vector<1x1x1xf32>
    %49 = vector.extract %48[0, 0, 0] : f32 from vector<1x1x1xf32>
    %cst_18 = arith.constant 5.000000e-01 : f32
    %50 = arith.mulf %cst_18, %49 : f32
    %c0_i32_19 = arith.constant 0 : i32
    %51 = arith.cmpi eq, %arg0, %c0_i32_19 : i32
    %52 = arith.extui %51 : i1 to i32
    %c0_i32_20 = arith.constant 0 : i32
    %53 = arith.cmpi ne, %52, %c0_i32_20 : i32
    scf.if %53 {
      %cst_27 = arith.constant 0.000000e+00 : f32
      %c0_28 = arith.constant 0 : index
      %66 = memref.load %arg4[%c0_28] : memref<4xf32, #tpu.memory_space<smem>>
      memref.store %cst_27, %arg4[%c0_28] : memref<4xf32, #tpu.memory_space<smem>>
      %cst_29 = arith.constant 0.000000e+00 : f32
      %c1_30 = arith.constant 1 : index
      %67 = memref.load %arg4[%c1_30] : memref<4xf32, #tpu.memory_space<smem>>
      memref.store %cst_29, %arg4[%c1_30] : memref<4xf32, #tpu.memory_space<smem>>
      %cst_31 = arith.constant 0.000000e+00 : f32
      %c2_32 = arith.constant 2 : index
      %68 = memref.load %arg4[%c2_32] : memref<4xf32, #tpu.memory_space<smem>>
      memref.store %cst_31, %arg4[%c2_32] : memref<4xf32, #tpu.memory_space<smem>>
      %cst_33 = arith.constant 0.000000e+00 : f32
      %c3 = arith.constant 3 : index
      %69 = memref.load %arg4[%c3] : memref<4xf32, #tpu.memory_space<smem>>
      memref.store %cst_33, %arg4[%c3] : memref<4xf32, #tpu.memory_space<smem>>
    } else {
    }
    %c0_21 = arith.constant 0 : index
    %54 = memref.load %arg4[%c0_21] : memref<4xf32, #tpu.memory_space<smem>>
    %55 = arith.addf %54, %34 : f32
    %c0_22 = arith.constant 0 : index
    %56 = memref.load %arg4[%c0_22] : memref<4xf32, #tpu.memory_space<smem>>
    memref.store %55, %arg4[%c0_22] : memref<4xf32, #tpu.memory_space<smem>>
    %c1 = arith.constant 1 : index
    %57 = memref.load %arg4[%c1] : memref<4xf32, #tpu.memory_space<smem>>
    %58 = arith.addf %57, %41 : f32
    %c1_23 = arith.constant 1 : index
    %59 = memref.load %arg4[%c1_23] : memref<4xf32, #tpu.memory_space<smem>>
    memref.store %58, %arg4[%c1_23] : memref<4xf32, #tpu.memory_space<smem>>
    %c2 = arith.constant 2 : index
    %60 = memref.load %arg4[%c2] : memref<4xf32, #tpu.memory_space<smem>>
    %61 = arith.addf %60, %50 : f32
    %c2_24 = arith.constant 2 : index
    %62 = memref.load %arg4[%c2_24] : memref<4xf32, #tpu.memory_space<smem>>
    memref.store %61, %arg4[%c2_24] : memref<4xf32, #tpu.memory_space<smem>>
    %c0_i32_25 = arith.constant 0 : i32
    %63 = arith.cmpi eq, %arg0, %c0_i32_25 : i32
    %64 = arith.extui %63 : i1 to i32
    %c0_i32_26 = arith.constant 0 : i32
    %65 = arith.cmpi ne, %64, %c0_i32_26 : i32
    scf.if %65 {
      %c0_27 = arith.constant 0 : index
      %66 = memref.load %arg4[%c0_27] : memref<4xf32, #tpu.memory_space<smem>>
      %c1_28 = arith.constant 1 : index
      %67 = memref.load %arg4[%c1_28] : memref<4xf32, #tpu.memory_space<smem>>
      %68 = arith.addf %66, %67 : f32
      %c2_29 = arith.constant 2 : index
      %69 = memref.load %arg4[%c2_29] : memref<4xf32, #tpu.memory_space<smem>>
      %70 = arith.addf %68, %69 : f32
      %c3 = arith.constant 3 : index
      %71 = memref.load %arg4[%c3] : memref<4xf32, #tpu.memory_space<smem>>
      memref.store %70, %arg4[%c3] : memref<4xf32, #tpu.memory_space<smem>>
    } else {
    }
    return
  }
  func.func @transform_0(%arg0: i32) -> (i32, i32) {
    %c0_i32 = arith.constant 0 : i32
    %c0_i32_0 = arith.constant 0 : i32
    return %arg0, %c0_i32 : i32, i32
  }
  func.func @transform_1(%arg0: i32) -> (i32, i32) {
    %c0_i32 = arith.constant 0 : i32
    %c0_i32_0 = arith.constant 0 : i32
    return %arg0, %c0_i32 : i32, i32
  }
  func.func @transform_2(%arg0: i32) -> (i32, i32) {
    %c0_i32 = arith.constant 0 : i32
    %c0_i32_0 = arith.constant 0 : i32
    return %arg0, %c0_i32 : i32, i32
  }
  func.func @transform_3(%arg0: i32) -> i32 {
    %c0_i32 = arith.constant 0 : i32
    %c0_i32_0 = arith.constant 0 : i32
    return %c0_i32 : i32
  }
}

</mosaic_0001>

<bundles_post_ra>
// kernel: squeeze.5
= control target key start
LH: loop header
LB: loop body
LE: loop exit
PB: predicated region body
PF: predicated region fallthrough
CT: control target
= control target key end

     0   :  { %s7_s6 = smov 3  ;;  %s21_s9 = smov 3  ;;  %vm4_vm0 = vcmask 80896   ;;  %vm11_vm1 = vcmask 818896   ;;  %vm18_vm2 = vcmask 736896   ;;  %vm25_vm3 = vcmask 654896   ;;  %s147_s0 = inlined_call_operand.vmem [shape: f32[2,10,10,1], index: 0, kind: input, shape index: {}]   ;;  %s148_s1 = inlined_call_operand.vmem [shape: f32[2,100], index: 1, kind: output, shape index: {}]  }
   0x1   :  { %v77_v0 = vld [vmem:[%s147_s0 + $0x9] ss:$16 sm:%s7_s6]   ;;  %s95_s10 = smov 90   ;;  %v79_v1 = vld [vmem:[%s147_s0 + $0x7] ss:$16 sm:%s21_s9]   ;;  %s14_s13 = smov 3 }
   0x2   :  { %9 = vrot.lane.b32.xlu0 %v77_v0, %s95_s10  ;;  %s96_s14 = smov 70   ;;  %v78_v2 = vld [vmem:[%s147_s0 + $0x8] ss:$16 sm:%s14_s13]   ;;  %s28_s17 = smov 3  ;;  %vm32_vm4 = vcmask 572896   ;;  %vm39_vm5 = vcmask 490896  }
   0x3   :  { %23 = vrot.lane.b32.xlu1 %v79_v1, %s96_s14  ;;  %v80_v3 = vld [vmem:[%s147_s0 + $0x6] ss:$16 sm:%s28_s17]   ;;  %s35_s20 = smov 3  ;;  %s42_s21 = smov 3  ;;  %vm46_vm6 = vcmask 408896   ;;  %vm53_vm7 = vcmask 326896  }
   0x4   :  { %s97_s22 = smov 80   ;;  %s98_s23 = smov 60   ;;  %v81_v4 = vld [vmem:[%s147_s0 + $0x5] ss:$16 sm:%s35_s20]   ;;  %v82_v5 = vld [vmem:[%s147_s0 + $0x4] ss:$16 sm:%s42_s21]  }
   0x5   :  { %s49_s28 = smov 3  ;;  %s56_s29 = smov 3  ;;  %vm60_vm8 = vcmask 244896   ;;  %vm67_vm9 = vcmask 162896  }
   0x6   :  { %16 = vrot.lane.b32.xlu0 %v78_v2, %s97_s22  ;;  %s2_s30 = smov 3  ;;  %s99_s2 = smov 50   ;;  %v83_v7 = vld [vmem:[%s147_s0 + $0x3] ss:$16 sm:%s49_s28]  }
   0x7   :  { %30 = vrot.lane.b32.xlu1 %v80_v3, %s98_s23  ;;  %v3_v6 = vld [vmem:[%s147_s0] ss:$16 sm:%s2_s30]   ;;  %s100_s5 = smov 40   ;;  %s63_s10 = smov 3 }
   0x8   :  { %5 = vst.msk [vmem:[#allocation0] sm:$0x3] %vm4_vm0, %v3_v6   ;;  %v84_v8 = vld [vmem:[%s147_s0 + $0x2] ss:$16 sm:%s56_s29]   ;;  %s101_s11 = smov 30   ;;  %s102_s12 = smov 20  }
   0x9   :  { %v85_v9 = vld [vmem:[%s147_s0 + $0x1] ss:$16 sm:%s63_s10]   ;;  %s103_s0 = smov 10  }
   0xa   :  { %37 = vrot.lane.b32.xlu0 %v81_v4, %s99_s2 }
   0xb   :  { %44 = vrot.lane.b32.xlu1 %v82_v5, %s100_s5 }
   0xe   :  { %51 = vrot.lane.b32.xlu0 %v83_v7, %s101_s11 }
   0xf   :  { %58 = vrot.lane.b32.xlu1 %v84_v8, %s102_s12 }
  0x12   :  { %65 = vrot.lane.b32.xlu0 %v85_v9, %s103_s0 }
  0x74   :  { %v10_v10 = vpop.permute.xlu0 %9  }
  0x75   :  { %12 = vst.msk [vmem:[#allocation0] sm:$0x3] %vm11_vm1, %v10_v10   ;;  %v24_v11 = vpop.permute.xlu1 %23  }
  0x78   :  { %v17_v12 = vpop.permute.xlu0 %16  }
  0x79   :  { %19 = vst.msk [vmem:[#allocation0] sm:$0x3] %vm18_vm2, %v17_v12   ;;  %v31_v13 = vpop.permute.xlu1 %30  }
  0x7a   :  { %26 = vst.msk [vmem:[#allocation0] sm:$0x3] %vm25_vm3, %v24_v11  }
  0x7b   :  { %33 = vst.msk [vmem:[#allocation0] sm:$0x3] %vm32_vm4, %v31_v13  }
  0x7c   :  { %v38_v14 = vpop.permute.xlu0 %37  }
  0x7d   :  { %40 = vst.msk [vmem:[#allocation0] sm:$0x3] %vm39_vm5, %v38_v14   ;;  %v45_v15 = vpop.permute.xlu1 %44  }
  0x7e   :  { %47 = vst.msk [vmem:[#allocation0] sm:$0x3] %vm46_vm6, %v45_v15  }
  0x80   :  { %v52_v16 = vpop.permute.xlu0 %51  }
  0x81   :  { %54 = vst.msk [vmem:[#allocation0] sm:$0x3] %vm53_vm7, %v52_v16   ;;  %v59_v17 = vpop.permute.xlu1 %58  }
  0x82   :  { %61 = vst.msk [vmem:[#allocation0] sm:$0x3] %vm60_vm8, %v59_v17  }
  0x84   :  { %v66_v18 = vpop.permute.xlu0 %65  }
  0x85   :  { %68 = vst.msk [vmem:[#allocation0] sm:$0x3] %vm67_vm9, %v66_v18  }
  0x8c   :  { %v73_v19 = vld [vmem:[#allocation0] sm:$0x3] }
  0x8d   :  { %76 = vst [vmem:[%s148_s1] sm:$0x3] %v73_v19 }

// kernel: yolo_loss.1
= control target key start
LH: loop header
LB: loop body
LE: loop exit
PB: predicated region body
PF: predicated region fallthrough
CT: control target
= control target key end

     0   :  { %v20_v0 = vlaneseq  ;;  %s424_s0 = inlined_call_operand.vmem [shape: f32[2,512], index: 0, kind: input, shape index: {}]   ;;  %s425_s1 = inlined_call_operand.vmem [shape: f32[2,512], index: 1, kind: input, shape index: {}]   ;;  %s426_s2 = inlined_call_operand.vmem [shape: f32[2,512], index: 2, kind: input, shape index: {}]   ;;  %s427_s3 = inlined_call_operand.vmem [shape: f32[4], index: 3, kind: output, shape index: {}]  }
   0x1   :  { %8 = vsyncpa [#allocation3], 0  ;;  %v352_v16 = vmov 1983009808   ;;  %v15_v37 = vld [vmem:[%s424_s0] sm:$0xff]  ;;  %v353_v40 = vmov 0  }
   0x2   :  { %v21_v1 = vand.u32 127, %v20_v0  ;;  %v105_v17 = vunpack.c.l.s4 %v352_v16  ;;  %v108_v27 = vshrl.u32 %v20_v0, 7  ;;  %v16_v38 = vld [vmem:[%s425_s1] sm:$0xff]  ;;  %vm354_vm15 = vmmov 1   ;;  %s306_s23 = sshll.u32 %s427_s3, 4  ;;  %s307_s23 = int_to_ptr.vmem [resolvable:$true] %s306_s23 }
   0x3   :  { %v17_v42 = vld [vmem:[%s426_s2] sm:$0xff]  ;;  %v18_v49 = vsub.f32 %v16_v38, %v15_v37  ;;  %s338_s25 = scalar_lea.vmem %s307_s23, 16  ;;  %p343_p1 = scmp.lt.s32.totalorder %s307_s23, %s307_s23 }
   0x4   :  { %v22_v2 = vadd.s32 128, %v21_v1  ;;  %v23_v3 = vadd.s32 256, %v21_v1  ;;  %v24_v4 = vadd.s32 384, %v21_v1  ;;  %v106_v26 = vunpack.c.0.s8 %v105_v17  ;;  %p339_p0 = scmp.ne.s32.totalorder %s307_s23, %s338_s25  ;;  %p344_p2 = scmp.lt.s32.totalorder %s338_s25, %s338_s25 }
   0x5   :  { %v376_v5 = vmul.u32.u64.low 3435973837, %v21_v1  ;;  %v377_v6 = vmul.u32.u64.high 3435973837, %v21_v1, %v376_v5  ;;  %v19_v58 = vmul.f32 %v18_v49, %v18_v49 }
   0x6   :  { %v379_v7 = vmul.u32.u64.low 3435973837, %v22_v2  ;;  %v380_v8 = vmul.u32.u64.high 3435973837, %v22_v2, %v379_v7  ;;  %v382_v9 = vmul.u32.u64.low 3435973837, %v23_v3  ;;  %v383_v10 = vmul.u32.u64.high 3435973837, %v23_v3, %v382_v9  ;;  %p345_p3 = por %p344_p2, %p343_p1 }
   0x7   :  { %v385_v11 = vmul.u32.u64.low 3435973837, %v24_v4  ;;  %v386_v12 = vmul.u32.u64.high 3435973837, %v24_v4, %v385_v11  ;;  %v31_v13 = vshrl.u32 %v377_v6, 2  ;;  %v109_v36 = vsub.s32 %v106_v26, %v108_v27 }
   0x8   :  { %v42_v14 = vshrl.u32 %v380_v8, 2  ;;  %v53_v15 = vshrl.u32 %v383_v10, 2  ;;  %p346_p4 = pnand %p345_p3, %p339_p0 }
   0x9   :  { %v32_v18 = vmul.u32 5, %v31_v13  ;;  %v64_v19 = vshrl.u32 %v386_v12, 2 }
   0xa   :  { %v43_v20 = vmul.u32 5, %v42_v14  ;;  %v54_v21 = vmul.u32 5, %v53_v15 }
   0xb   :  { %v33_v22 = vsub.s32 %v21_v1, %v32_v18  ;;  %v65_v23 = vmul.u32 5, %v64_v19 }
   0xc   :  { %v44_v24 = vsub.s32 %v22_v2, %v43_v20  ;;  %v55_v25 = vsub.s32 %v23_v3, %v54_v21 }
   0xd   :  { %v66_v28 = vsub.s32 %v24_v4, %v65_v23  ;;  %vm69_vm0 = vcmp.ne.s32.totalorder %v33_v22, 0  ;;  %vm73_vm1 = vcmp.lt.s32.totalorder %v33_v22, 0  ;;  %v81_v29 = vadd.s32 5, %v33_v22 }
   0xe   :  { %vm70_vm2 = vcmp.ne.s32.totalorder %v44_v24, 0  ;;  %vm71_vm3 = vcmp.ne.s32.totalorder %v55_v25, 0  ;;  %vm74_vm4 = vcmp.lt.s32.totalorder %v44_v24, 0  ;;  %vm75_vm5 = vcmp.lt.s32.totalorder %v55_v25, 0  ;;  %vm77_vm6 = vmand %vm73_vm1, %vm69_vm0 }
   0xf   :  { %vm72_vm7 = vcmp.ne.s32.totalorder %v66_v28, 0  ;;  %vm76_vm8 = vcmp.lt.s32.totalorder %v66_v28, 0  ;;  %vm78_vm9 = vmand %vm74_vm4, %vm70_vm2  ;;  %v82_v30 = vadd.s32 5, %v44_v24  ;;  %v83_v31 = vadd.s32 5, %v55_v25 }
  0x10   :  { %vm79_vm10 = vmand %vm75_vm5, %vm71_vm3  ;;  %v84_v32 = vadd.s32 5, %v66_v28  ;;  %v85_v33 = vsel %vm77_vm6, %v81_v29, %v33_v22  ;;  %vm93_vm5 = vcmp.eq.f32.partialorder %v17_v42, 1.0 }
  0x11   :  { %vm80_vm11 = vmand %vm76_vm8, %vm72_vm7  ;;  %v86_v34 = vsel %vm78_vm9, %v82_v30, %v44_v24  ;;  %v87_v35 = vsel %vm79_vm10, %v83_v31, %v55_v25  ;;  %vm89_vm12 = vcmp.eq.s32.totalorder %v85_v33, 0  ;;  %vm144_vm9 = vcmask 1041408  }
  0x12   :  { %v88_v39 = vsel %vm80_vm11, %v84_v32, %v66_v28  ;;  %vm90_vm13 = vcmp.eq.s32.totalorder %v86_v34, 0  ;;  %vm91_vm14 = vcmp.eq.s32.totalorder %v87_v35, 0  ;;  %v162_v41 = vsel %vm89_vm12, 1, %v353_v40  ;;  %vm94_vm0 = vmxor %vm89_vm12, %vm354_vm15 }
  0x13   :  { %vm92_vm1 = vcmp.eq.s32.totalorder %v88_v39, 0  ;;  %v163_v43 = vsel %vm90_vm13, 1, %v353_v40  ;;  %v164_v44 = vsel %vm91_vm14, 1, %v353_v40  ;;  %vm95_vm2 = vmxor %vm90_vm13, %vm354_vm15  ;;  %v98_v45 = vsel %vm94_vm0, 1, %v353_v40 }
  0x14   :  { %v165_v46 = vsel %vm92_vm1, 1, %v353_v40  ;;  %v166_v47 = vcombine.low %v162_v41, %v163_v43  ;;  %vm96_vm3 = vmxor %vm91_vm14, %vm354_vm15  ;;  %v99_v48 = vsel %vm95_vm2, 1, %v353_v40 }
  0x15   :  { %v167_v50 = vcombine.low %v164_v44, %v165_v46  ;;  %vm97_vm4 = vmxor %vm92_vm1, %vm354_vm15  ;;  %v100_v51 = vsel %vm96_vm3, 1, %v353_v40  ;;  %v102_v52 = vcombine.low %v98_v45, %v99_v48 }
  0x16   :  { %v174_v53 = vrot.slane %v166_v47, %v109_v36  ;;  %v101_v54 = vsel %vm97_vm4, 1, %v353_v40  ;;  %vm224_vm6 = vmxor %vm93_vm5, %vm354_vm15 }
  0x17   :  { %v181_v55 = vrot.slane %v167_v50, %v109_v36  ;;  %v103_v56 = vcombine.low %v100_v51, %v101_v54  ;;  %v110_v57 = vrot.slane %v102_v52, %v109_v36 }
  0x19   :  { %v182_v59 = vcombine.low %v174_v53, %v181_v55  ;;  %v117_v60 = vrot.slane %v103_v56, %v109_v36 }
  0x1b   :  { %vm183_vm7 = vcmp.ne.s32.totalorder %v182_v59, 0  ;;  %v118_v61 = vcombine.low %v110_v57, %v117_v60 }
  0x1c   :  { %vm225_vm8 = vmand %vm224_vm6, %vm183_vm7 }
  0x1d   :  { %v226_v62 = vsel %vm225_vm8, %v19_v58, 0.0  ;;  %vm119_vm10 = vcmp.ne.s32.totalorder %v118_v61, 0  ;;  %vm184_vm11 = vmand %vm93_vm5, %vm183_vm7 }
  0x1e   :  { %v228_v63 = vcombine.high %v226_v62, %v226_v62  ;;  %v235_v0 = vrot.slane %v226_v62, %v109_v36  ;;  %vm120_vm12 = vmand %vm93_vm5, %vm119_vm10  ;;  %v185_v1 = vsel %vm184_vm11, %v19_v58, 0.0 }
  0x1f   :  { %v121_v2 = vsel %vm120_vm12, %v19_v58, 0.0  ;;  %v187_v3 = vcombine.high %v185_v1, %v185_v1  ;;  %v194_v4 = vrot.slane %v185_v1, %v109_v36 }
  0x20   :  { %v242_v5 = vrot.slane %v228_v63, %v109_v36  ;;  %v243_v6 = vcombine.high %v235_v0, %v235_v0  ;;  %v249_v7 = vsel %vm144_vm9, %v235_v0, 0.0  ;;  %v123_v8 = vcombine.high %v121_v2, %v121_v2 }
  0x21   :  { %v130_v9 = vrot.slane %v121_v2, %v109_v36  ;;  %v201_v10 = vrot.slane %v187_v3, %v109_v36  ;;  %v202_v11 = vcombine.high %v194_v4, %v194_v4  ;;  %v208_v12 = vsel %vm144_vm9, %v194_v4, 0.0 }
  0x22   :  { %v244_v13 = vcombine.high %v242_v5, %v242_v5  ;;  %v250_v14 = vsel %vm144_vm9, %v243_v6, 0.0  ;;  %v252_v15 = vsel %vm144_vm9, %v242_v5, 0.0  ;;  %v137_v16 = vrot.slane %v123_v8, %v109_v36 }
  0x23   :  { %v251_v17 = vadd.f32 %v250_v14, %v249_v7  ;;  %v138_v18 = vcombine.high %v130_v9, %v130_v9  ;;  %v145_v19 = vsel %vm144_vm9, %v130_v9, 0.0  ;;  %v203_v20 = vcombine.high %v201_v10, %v201_v10 }
  0x24   :  { %v254_v21 = vsel %vm144_vm9, %v244_v13, 0.0  ;;  %v139_v22 = vcombine.high %v137_v16, %v137_v16  ;;  %v148_v23 = vsel %vm144_vm9, %v137_v16, 0.0  ;;  %v209_v24 = vsel %vm144_vm9, %v202_v11, 0.0 }
  0x25   :  { %v253_v25 = vadd.f32 %v252_v15, %v251_v17  ;;  %v146_v26 = vsel %vm144_vm9, %v138_v18, 0.0  ;;  %v210_v27 = vadd.f32 %v209_v24, %v208_v12  ;;  %v211_v28 = vsel %vm144_vm9, %v201_v10, 0.0 }
  0x26   :  { %v147_v29 = vadd.f32 %v146_v26, %v145_v19  ;;  %v150_v31 = vsel %vm144_vm9, %v139_v22, 0.0  ;;  %v213_v34 = vsel %vm144_vm9, %v203_v20, 0.0 }
  0x27   :  { %v255_v30 = vadd.f32 %v254_v21, %v253_v25  ;;  %v212_v33 = vadd.f32 %v211_v28, %v210_v27 }
  0x28   :  { %v149_v32 = vadd.f32 %v148_v23, %v147_v29 }
  0x29   :  { %256 = vadd.xlane.f32.xlu1 %v255_v30  ;;  %v214_v36 = vadd.f32 %v213_v34, %v212_v33 }
  0x2a   :  { %v151_v35 = vadd.f32 %v150_v31, %v149_v32 }
  0x2c   :  { %152 = vadd.xlane.f32.xlu0 %v151_v35 }
  0x30   :  { %215 = vadd.xlane.f32.xlu0 %v214_v36 }
  0xb2   :  { %v257_v37 = vpop.xlane.xlu1 %256 }
  0xb3   :  { %v258_v38 = vrot.slane %v257_v37, 4 }
  0xb5   :  { %v259_v39 = vadd.f32 %v258_v38, %v257_v37  ;;  %v153_v40 = vpop.xlane.xlu0 %152 }
  0xb6   :  { %v154_v41 = vrot.slane %v153_v40, 4 }
  0xb7   :  { %v260_v43 = vrot.slane %v259_v39, 2 }
  0xb8   :  { %v155_v42 = vadd.f32 %v154_v41, %v153_v40 }
  0xb9   :  { %v216_v44 = vpop.xlane.xlu0 %215  ;;  %v261_v49 = vadd.f32 %v260_v43, %v259_v39 }
  0xba   :  { %v156_v45 = vrot.slane %v155_v42, 2  ;;  %v217_v46 = vrot.slane %v216_v44, 4 }
  0xbb   :  { %v262_v54 = vrot.slane %v261_v49, 1 }
  0xbc   :  { %v218_v47 = vadd.f32 %v217_v46, %v216_v44  ;;  %v157_v48 = vadd.f32 %v156_v45, %v155_v42 }
  0xbd   :  { %v263_v57 = vadd.f32 %v262_v54, %v261_v49 }
  0xbe   :  { %v219_v50 = vrot.slane %v218_v47, 2  ;;  %v158_v51 = vrot.slane %v157_v48, 1 }
  0xc0   :  { %v220_v52 = vadd.f32 %v219_v50, %v218_v47  ;;  %v159_v53 = vadd.f32 %v158_v51, %v157_v48 }
  0xc2   :  { %327 = vpush %v159_v53  ;;  %v221_v55 = vrot.slane %v220_v52, 1 }
  0xc4   :  { %v222_v56 = vadd.f32 %v221_v55, %v220_v52 }
  0xc6   :  { %329 = vpush %v222_v56 }
  0xc7   :  { %331 = vpush %v263_v57 }
  0xf3   :  { %s328_s0 = spop %327 }
  0xf4   :  { %s161_s1 = smul.f32 5.0, %s328_s0 }
  0xf6   :  { %281 = sst [smem:[#allocation2]] %s161_s1 }
  0xf7   :  { %s330_s2 = spop %329 }
  0xf8   :  { %s332_s18 = spop %331  ;;  %285 = sst [smem:[#allocation2 + $0x1]] %s330_s2 }
  0xf9   :  { %s265_s19 = smul.f32 0.5, %s332_s18  ;;  %s295_s20 = sadd.f32 %s330_s2, %s161_s1 }
  0xfb   :  { %289 = sst [smem:[#allocation2 + $0x2]] %s265_s19 }
  0xfc   :  { %s297_s24 = sadd.f32 %s295_s20, %s265_s19 }
  0xfe   :  { %299 = sst [smem:[#allocation2 + $0x3]] %s297_s24 }
  0xff   :  { %349 = shalt.err (!%p346_p4)
}
 0x100   :  { %s355_s26 = smov [#allocation2]  }
 0x101   :  { %309 = dma.smem_to_vmem %s355_s26, 16, %s307_s23, [#allocation3]  }
 0x102   :  { %350 = dma.done.wait [#allocation3], 16  }
 0x103   :  { %351 = vsyncadd [#allocation3], 4294967280 }
 0x104   :  { %313 = sfence }
 0x105   :  { %314 = vsyncpa [#allocation3], 1 }

</bundles_post_ra>
